<compile_context>
chip_gen: v7x
topology: tpu7x:2x2x1
jax: 0.10.0
libtpu: 0.0.40
codegen_flags: <defaults>
</compile_context>

<pallas_src>
import numpy as np
import jax
import jax.numpy as jnp
from jax.experimental import pallas as pl
from jax.experimental.pallas import tpu as pltpu

# ---- small, forward-consistent hyper-parameters ----
B = 2          # batch
N = 8          # num_nodes
T = 12         # seq_length
BN = B * N     # folded rows (batch * nodes) handled by one kernel invocation
NODE_DIM = 40  # node_dim for graph constructor
H1 = 64        # linear1 / linear3 hidden size
HG = 16        # Gated_GNNML output dim (linear2 expects 16)
ALPHA = 3.0    # tanhalpha
KSIZE = 25     # series_decomp kernel size
EPS = 1e-5     # LayerNorm eps

LANE = 128     # TPU lane width; every packed segment starts at a multiple of this

# ---- lane-aligned packed-slab layouts (all offsets are multiples of 128) ----
# W1 slab  (rows = T+1, last row is the bias row): [ w_skip_total | pad | w_h ]
W1_ROWS = T + 1
W1_COLS = LANE + H1            # 192 : skip_total at [0:12], w_h at [128:192]
# WG slab  (rows = H1): [ wg1 | pad | wg2 ]
WG_COLS = LANE + HG            # 144 : wg1 at [0:16], wg2 at [128:144]
# W16 slab (rows = BN): [ block-diag(A+A^T) | pad | w_lin2 ]
W16_COLS = LANE + T            # 140 : A+A^T at [0:16], w_lin2 at [128:140]
# WE slab  (rows = T):  [ w_e1 | pad | w_lin3 ]
WE_COLS = LANE + H1            # 192 : w_e1 at [0:12], w_lin3 at [128:192]
# EW slab  (rows = BN, f32): pre-broadcast biases + LayerNorm affine, lane-aligned
EW_BG = 0 * LANE               # bg1 at [0:16], bg2 at [128:144] (matches y2 layout)
EW_B2 = 2 * LANE               # b_lin2 (12)
EW_GAMMA = 3 * LANE            # gamma  (12)
EW_BETA = 4 * LANE             # beta   (12)
EW_BE1 = 5 * LANE              # b_e1   (12)
EW_B3 = 6 * LANE               # b_lin3 (64)
EW_B4 = 7 * LANE               # b_lin4 (1)
EW_COLS = 8 * LANE             # 1024


def tdg4msf_kernel(xa_ref, xr_ref, w1_ref, wg_ref, w16_ref, we_ref, w4_ref,
                   pm_ref, ew_ref, out_ref):
    f32, bf16 = jnp.float32, jnp.bfloat16
    mm = lambda a, b: jnp.dot(a, b, preferred_element_type=f32)

    # --- fused matmul #1: x_aug @ [w_skip_total | w_h], biases folded via ones col.
    # w_skip_total already contains skip0 + the composed skip1 scalar (host-side),
    # w_h is the exact composition of both series decompositions + linear1.
    y1 = mm(xa_ref[...], w1_ref[...])                         # (BN, 192) f32
    skip = y1[:, 0:T]                                         # lane-aligned slice
    h = y1[:, LANE:LANE + H1]                                 # lane-aligned slice

    # --- gated GNN (substitute for layer.Gated_GNNML) ------------------------
    # (A@msg)*gate + (A^T@msg)*gate == ((A+A^T)@msg)*gate; block-diag over batch.
    y2 = mm(h.astype(bf16), wg_ref[...]) + ew_ref[:, EW_BG:EW_BG + WG_COLS]
    msg = y2[:, 0:HG]
    gate = jax.nn.sigmoid(y2[:, LANE:LANE + HG])
    g = mm(w16_ref[:, 0:BN], msg.astype(bf16)) * gate         # (BN, HG)
    xx = mm(g.astype(bf16), w16_ref[:, LANE:LANE + T]) + ew_ref[:, EW_B2:EW_B2 + T]

    # residual connection (f32 input kept separately, no bf16 round trip)
    xx = xx + xr_ref[...]                                     # (BN, T)

    # --- per-batch LayerNorm, concat-free: block-averaging matmul for E[x], E[x^2]
    rs = jnp.sum(xx, axis=-1, keepdims=True)                  # (BN, 1)
    rs2 = jnp.sum(xx * xx, axis=-1, keepdims=True)            # (BN, 1)
    mu = mm(pm_ref[...], rs)                                  # per-batch mean, bcast rows
    mu2 = mm(pm_ref[...], rs2)
    var = jnp.maximum(mu2 - mu * mu, 0.0)                     # clamp before rsqrt
    xx = ((xx - mu) * jax.lax.rsqrt(var + EPS)
          * ew_ref[:, EW_GAMMA:EW_GAMMA + T] + ew_ref[:, EW_BETA:EW_BETA + T])

    # --- e1 (1x1 conv over time) + output head -------------------------------
    xx = mm(xx.astype(bf16), we_ref[:, 0:T]) + ew_ref[:, EW_BE1:EW_BE1 + T]
    skip = xx + skip
    xx = jnp.maximum(skip, 0.0)
    xx = jnp.maximum(mm(xx.astype(bf16), we_ref[:, LANE:LANE + H1])
                     + ew_ref[:, EW_B3:EW_B3 + H1], 0.0)      # (BN, 64)
    out_ref[...] = mm(xx.astype(bf16), w4_ref[...]) + ew_ref[:, EW_B4:EW_B4 + 1]


@jax.jit
def tdg4msf_forward(x4, packed):
    """x4: (B, 1, N, T) input; packed: the 7 pre-packed, lane-aligned weight slabs."""
    w1, wg, w16, we, w4, pm, ew = packed
    x = jnp.squeeze(x4, axis=1).astype(jnp.float32).reshape(BN, T)   # batch-major rows
    x_aug = jnp.concatenate([x, jnp.ones((BN, 1), jnp.float32)], axis=1)
    x_aug = x_aug.astype(jnp.bfloat16)                               # MXU operand
    # Single invocation, whole arrays resident in VMEM; no grid => no pipeline
    # fixed cost. Total footprint < 200 KiB, so VMEM budgeting is a non-issue on
    # v5e/v6e/v7x alike.
    vmem = pl.BlockSpec(memory_space=pltpu.MemorySpace.VMEM)
    out = pl.pallas_call(
        tdg4msf_kernel,
        out_shape=jax.ShapeDtypeStruct((BN, 1), jnp.float32),
        in_specs=[vmem] * 9,
        out_specs=vmem,
    )(x_aug, x, w1, wg, w16, we, w4, pm, ew)
    return out.reshape(B, N, 1)


# ---------------- parameter / constant construction (deterministic) ----------------
def moving_avg_matrix(t, k):
    """(T, T) matrix M s.t. x @ M == DLinear moving_avg (replicate padding, kernel k)."""
    pad = (k - 1) // 2
    m = np.zeros((t, t), np.float32)
    for t_out in range(t):
        for j in range(k):
            src = min(max(t_out + j - pad, 0), t - 1)
            m[src, t_out] += 1.0 / k
    return jnp.asarray(m)


def graph_constructor(key):
    """MTGNN-style learned adjacency; forward only uses its nonzero structure."""
    k1, k2, k3, k4 = jax.random.split(key, 4)
    emb1 = 0.1 * jax.random.normal(k1, (N, NODE_DIM), jnp.float32)
    emb2 = 0.1 * jax.random.normal(k2, (N, NODE_DIM), jnp.float32)
    lin1 = 0.1 * jax.random.normal(k3, (NODE_DIM, NODE_DIM), jnp.float32)
    lin2 = 0.1 * jax.random.normal(k4, (NODE_DIM, NODE_DIM), jnp.float32)
    n1 = jnp.tanh(ALPHA * (emb1 @ lin1))
    n2 = jnp.tanh(ALPHA * (emb2 @ lin2))
    a = jax.nn.relu(jnp.tanh(ALPHA * (n1 @ n2.T - n2 @ n1.T)))
    # TODO(synk): top-k subgraph sparsification skipped (subgraph_size >= num_nodes here).
    a_bin = (a > 0).astype(jnp.float32)
    return a_bin, a_bin.T


def init_params(key):
    keys = iter(jax.random.split(key, 40))
    dense = lambda shape, s=0.1: (s * jax.random.normal(next(keys), shape)).astype(jnp.float32)
    p = {}
    p["w_skip0"], p["b_skip0"] = dense((T, T)), dense((1, T), 0.01)
    p["w_seas"], p["b_seas"] = dense((T, T)), dense((1, T), 0.01)
    p["w_trend"], p["b_trend"] = dense((T, T)), dense((1, T), 0.01)
    p["w_skip1"], p["b_skip1"] = dense((T, 1)), dense((1, 1), 0.01)
    p["w_lin1"], p["b_lin1"] = dense((T, H1)), dense((1, H1), 0.01)
    p["wg1"], p["bg1"] = dense((H1, HG)), dense((1, HG), 0.01)
    p["wg2"], p["bg2"] = dense((H1, HG)), dense((1, HG), 0.01)
    p["w_lin2"], p["b_lin2"] = dense((HG, T)), dense((1, T), 0.01)
    p["w_e1"], p["b_e1"] = dense((T, T)), dense((1, T), 0.01)
    p["w_lin3"], p["b_lin3"] = dense((T, H1)), dense((1, H1), 0.01)
    p["w_lin4"], p["b_lin4"] = dense((H1, 1)), dense((1, 1), 0.01)
    p["gamma"] = (1.0 + 0.1 * jax.random.normal(next(keys), (N, T))).astype(jnp.float32)
    p["beta"] = (0.1 * jax.random.normal(next(keys), (N, T))).astype(jnp.float32)
    return p


def pack_params(p):
    """Compose purely-linear chains and pack into lane-aligned slabs (exact algebra)."""
    f32, bf = jnp.float32, jnp.bfloat16
    eye = jnp.eye(T, dtype=f32)
    M = p["mavg"]
    M2 = M @ M
    # seasonal2 = x @ (I - 2M + M^2), trend1 + trend2 = x @ (2M - M^2)
    w_xx = (eye - 2.0 * M + M2) @ p["w_seas"] + (2.0 * M - M2) @ p["w_trend"]
    b_xx = p["b_seas"] + p["b_trend"]
    ones_row = jnp.ones((1, T), f32)
    # fold skip1 (a per-row scalar broadcast over T) into the skip0 columns
    w_skip_total = p["w_skip0"] + (w_xx @ p["w_skip1"]) @ ones_row
    b_skip_total = p["b_skip0"] + (b_xx @ p["w_skip1"] + p["b_skip1"]) @ ones_row
    w_h = w_xx @ p["w_lin1"]                       # linear1 composed with the decomp linears
    b_h = b_xx @ p["w_lin1"] + p["b_lin1"]

    w1 = jnp.zeros((W1_ROWS, W1_COLS), f32)
    w1 = w1.at[:T, 0:T].set(w_skip_total).at[T, 0:T].set(b_skip_total[0])
    w1 = w1.at[:T, LANE:LANE + H1].set(w_h).at[T, LANE:LANE + H1].set(b_h[0])

    wg = jnp.zeros((H1, WG_COLS), f32)
    wg = wg.at[:, 0:HG].set(p["wg1"]).at[:, LANE:LANE + HG].set(p["wg2"])

    a_sym = p["a_bin"] + p["a_bin_t"]
    a_bd = jnp.kron(jnp.eye(B, dtype=f32), a_sym)       # block-diag over the folded batch
    w16 = jnp.zeros((BN, W16_COLS), f32)
    w16 = w16.at[:, 0:BN].set(a_bd).at[:, LANE:LANE + T].set(p["w_lin2"])

    we = jnp.zeros((T, WE_COLS), f32)
    we = we.at[:, 0:T].set(p["w_e1"]).at[:, LANE:LANE + H1].set(p["w_lin3"])

    w4 = p["w_lin4"]

    # block-averaging matrix for the per-batch LayerNorm mean / mean-of-squares
    pm = jnp.kron(jnp.eye(B, dtype=f32), jnp.ones((N, N), f32)) / float(N * T)

    bcast = lambda b_: jnp.broadcast_to(b_, (BN, b_.shape[-1]))
    ew = jnp.zeros((BN, EW_COLS), f32)
    ew = ew.at[:, EW_BG:EW_BG + HG].set(bcast(p["bg1"]))
    ew = ew.at[:, EW_BG + LANE:EW_BG + LANE + HG].set(bcast(p["bg2"]))
    ew = ew.at[:, EW_B2:EW_B2 + T].set(bcast(p["b_lin2"]))
    ew = ew.at[:, EW_GAMMA:EW_GAMMA + T].set(jnp.tile(p["gamma"], (B, 1)))
    ew = ew.at[:, EW_BETA:EW_BETA + T].set(jnp.tile(p["beta"], (B, 1)))
    ew = ew.at[:, EW_BE1:EW_BE1 + T].set(bcast(p["b_e1"]))
    ew = ew.at[:, EW_B3:EW_B3 + H1].set(bcast(p["b_lin3"]))
    ew = ew.at[:, EW_B4:EW_B4 + 1].set(bcast(p["b_lin4"]))

    assert w1.shape == (W1_ROWS, W1_COLS) and wg.shape == (H1, WG_COLS)
    assert w16.shape == (BN, W16_COLS) and we.shape == (T, WE_COLS)
    assert pm.shape == (BN, BN) and ew.shape == (BN, EW_COLS)
    return (w1.astype(bf), wg.astype(bf), w16.astype(bf), we.astype(bf),
            w4.astype(bf), pm, ew)


# ---------------- pure-JAX reference (original, un-fused math, f32) ----------------
def reference_forward(x4, p):
    x = jnp.squeeze(x4, axis=1).astype(jnp.float32)          # (B, N, T)
    residual = x
    skip = x @ p["w_skip0"] + p["b_skip0"]
    trend1 = x @ p["mavg"]
    seasonal1 = x - trend1
    trend2 = seasonal1 @ p["mavg"]
    seasonal2 = seasonal1 - trend2
    xx = (seasonal2 @ p["w_seas"] + p["b_seas"]
          + (trend1 + trend2) @ p["w_trend"] + p["b_trend"])
    s = xx @ p["w_skip1"] + p["b_skip1"]
    skip = s + skip
    h = xx @ p["w_lin1"] + p["b_lin1"]
    msg = h @ p["wg1"] + p["bg1"]
    gate = jax.nn.sigmoid(h @ p["wg2"] + p["bg2"])
    g = (jnp.einsum("ij,bjf->bif", p["a_bin"], msg) * gate
         + jnp.einsum("ij,bjf->bif", p["a_bin_t"], msg) * gate)
    xx = g @ p["w_lin2"] + p["b_lin2"]
    xx = xx + residual
    mu = jnp.mean(xx, axis=(1, 2), keepdims=True)
    var = jnp.mean((xx - mu) ** 2, axis=(1, 2), keepdims=True)
    xx = (xx - mu) * jax.lax.rsqrt(var + EPS) * p["gamma"] + p["beta"]
    xx = xx @ p["w_e1"] + p["b_e1"]
    skip = xx + skip
    xx = jax.nn.relu(skip)
    xx = jax.nn.relu(xx @ p["w_lin3"] + p["b_lin3"])
    return xx @ p["w_lin4"] + p["b_lin4"]


if __name__ == "__main__":
    key = jax.random.PRNGKey(0)
    kx, kp, kg = jax.random.split(key, 3)

    params = init_params(kp)
    params["mavg"] = moving_avg_matrix(T, KSIZE)
    a_bin, a_bin_t = graph_constructor(kg)
    params["a_bin"], params["a_bin_t"] = a_bin, a_bin_t
    packed = pack_params(params)

    x = jax.random.normal(kx, (B, 1, N, T), dtype=jnp.float32)

    out = tdg4msf_forward(x, packed)
    out = jax.block_until_ready(out)
    assert out.shape == (B, N, 1)

    ref = reference_forward(x, params)
    # Tolerance accounts for bf16 MXU operands (single-pass) vs. the f32 reference.
    np.testing.assert_allclose(np.asarray(out), np.asarray(ref), rtol=5e-2, atol=1e-2)
    print("KERNEL_OK")
</pallas_src>

<mosaic_0001>
module attributes {stable_mosaic.version = 11 : i64} {
  func.func @tdg4msf_kernel(%arg0: memref<16x13xbf16, #tpu.memory_space<vmem>>, %arg1: memref<16x12xf32, #tpu.memory_space<vmem>>, %arg2: memref<13x192xbf16, #tpu.memory_space<vmem>>, %arg3: memref<64x144xbf16, #tpu.memory_space<vmem>>, %arg4: memref<16x140xbf16, #tpu.memory_space<vmem>>, %arg5: memref<12x192xbf16, #tpu.memory_space<vmem>>, %arg6: memref<64x1xbf16, #tpu.memory_space<vmem>>, %arg7: memref<16x16xf32, #tpu.memory_space<vmem>>, %arg8: memref<16x1024xf32, #tpu.memory_space<vmem>>, %arg9: memref<16x1xf32, #tpu.memory_space<vmem>>) attributes {dimension_semantics = [], scalar_prefetch = 0 : i64, scratch_operands = 0 : i64, tpu.core_type = #tpu.core_type<tc>} {
    %c0 = arith.constant 0 : index
    %c0_0 = arith.constant 0 : index
    %0 = vector.load %arg0[%c0, %c0_0] : memref<16x13xbf16, #tpu.memory_space<vmem>>, vector<16x13xbf16>
    %c0_1 = arith.constant 0 : index
    %c0_2 = arith.constant 0 : index
    %1 = vector.load %arg2[%c0_1, %c0_2] : memref<13x192xbf16, #tpu.memory_space<vmem>>, vector<13x192xbf16>
    %cst = arith.constant dense<0.000000e+00> : vector<16x192xf32>
    %2 = tpu.matmul %0, %1, %cst {dimension_numbers = #tpu.dot_dimension_numbers<[1], [0], [0], [1], [0, 0, 1, 1], [], []>} : vector<16x13xbf16>, vector<13x192xbf16>, vector<16x192xf32> -> vector<16x192xf32>
    %3 = vector.extract_strided_slice %2 {offsets = [0, 0], sizes = [16, 12], strides = [1, 1]} : vector<16x192xf32> to vector<16x12xf32>
    %4 = vector.extract_strided_slice %2 {offsets = [0, 128], sizes = [16, 64], strides = [1, 1]} : vector<16x192xf32> to vector<16x64xf32>
    %5 = arith.truncf %4 : vector<16x64xf32> to vector<16x64xbf16>
    %c0_3 = arith.constant 0 : index
    %c0_4 = arith.constant 0 : index
    %6 = vector.load %arg3[%c0_3, %c0_4] : memref<64x144xbf16, #tpu.memory_space<vmem>>, vector<64x144xbf16>
    %cst_5 = arith.constant dense<0.000000e+00> : vector<16x144xf32>
    %7 = tpu.matmul %5, %6, %cst_5 {dimension_numbers = #tpu.dot_dimension_numbers<[1], [0], [0], [1], [0, 0, 1, 1], [], []>} : vector<16x64xbf16>, vector<64x144xbf16>, vector<16x144xf32> -> vector<16x144xf32>
    %c0_6 = arith.constant 0 : index
    %c0_7 = arith.constant 0 : index
    %8 = vector.load %arg8[%c0_6, %c0_7] : memref<16x1024xf32, #tpu.memory_space<vmem>>, vector<16x144xf32>
    %9 = arith.addf %7, %8 : vector<16x144xf32>
    %10 = vector.extract_strided_slice %9 {offsets = [0, 0], sizes = [16, 16], strides = [1, 1]} : vector<16x144xf32> to vector<16x16xf32>
    %11 = vector.extract_strided_slice %9 {offsets = [0, 128], sizes = [16, 16], strides = [1, 1]} : vector<16x144xf32> to vector<16x16xf32>
    %12 = arith.negf %11 : vector<16x16xf32>
    %13 = math.exp %12 : vector<16x16xf32>
    %cst_8 = arith.constant 1.000000e+00 : f32
    %14 = vector.broadcast %cst_8 : f32 to vector<16x16xf32>
    %15 = arith.addf %14, %13 : vector<16x16xf32>
    %16 = arith.divf %14, %15 : vector<16x16xf32>
    %c0_9 = arith.constant 0 : index
    %c0_10 = arith.constant 0 : index
    %17 = vector.load %arg4[%c0_9, %c0_10] : memref<16x140xbf16, #tpu.memory_space<vmem>>, vector<16x16xbf16>
    %18 = arith.truncf %10 : vector<16x16xf32> to vector<16x16xbf16>
    %cst_11 = arith.constant dense<0.000000e+00> : vector<16x16xf32>
    %19 = tpu.matmul %17, %18, %cst_11 {dimension_numbers = #tpu.dot_dimension_numbers<[1], [0], [0], [1], [0, 0, 1, 1], [], []>} : vector<16x16xbf16>, vector<16x16xbf16>, vector<16x16xf32> -> vector<16x16xf32>
    %20 = arith.mulf %19, %16 : vector<16x16xf32>
    %21 = arith.truncf %20 : vector<16x16xf32> to vector<16x16xbf16>
    %c0_12 = arith.constant 0 : index
    %c128 = arith.constant 128 : index
    %22 = vector.load %arg4[%c0_12, %c128] : memref<16x140xbf16, #tpu.memory_space<vmem>>, vector<16x12xbf16>
    %cst_13 = arith.constant dense<0.000000e+00> : vector<16x12xf32>
    %23 = tpu.matmul %21, %22, %cst_13 {dimension_numbers = #tpu.dot_dimension_numbers<[1], [0], [0], [1], [0, 0, 1, 1], [], []>} : vector<16x16xbf16>, vector<16x12xbf16>, vector<16x12xf32> -> vector<16x12xf32>
    %c0_14 = arith.constant 0 : index
    %c256 = arith.constant 256 : index
    %24 = vector.load %arg8[%c0_14, %c256] : memref<16x1024xf32, #tpu.memory_space<vmem>>, vector<16x12xf32>
    %25 = arith.addf %23, %24 : vector<16x12xf32>
    %c0_15 = arith.constant 0 : index
    %c0_16 = arith.constant 0 : index
    %26 = vector.load %arg1[%c0_15, %c0_16] : memref<16x12xf32, #tpu.memory_space<vmem>>, vector<16x12xf32>
    %27 = arith.addf %25, %26 : vector<16x12xf32>
    %cst_17 = arith.constant dense<0.000000e+00> : vector<16xf32>
    %28 = vector.multi_reduction <add>, %27, %cst_17 [1] : vector<16x12xf32> to vector<16xf32>
    %29 = vector.shape_cast %28 : vector<16xf32> to vector<16x1xf32>
    %30 = arith.mulf %27, %27 : vector<16x12xf32>
    %cst_18 = arith.constant dense<0.000000e+00> : vector<16xf32>
    %31 = vector.multi_reduction <add>, %30, %cst_18 [1] : vector<16x12xf32> to vector<16xf32>
    %32 = vector.shape_cast %31 : vector<16xf32> to vector<16x1xf32>
    %c0_19 = arith.constant 0 : index
    %c0_20 = arith.constant 0 : index
    %33 = vector.load %arg7[%c0_19, %c0_20] : memref<16x16xf32, #tpu.memory_space<vmem>>, vector<16x16xf32>
    %cst_21 = arith.constant dense<0.000000e+00> : vector<16x1xf32>
    %34 = tpu.matmul %33, %29, %cst_21 {dimension_numbers = #tpu.dot_dimension_numbers<[1], [0], [0], [1], [0, 0, 1, 1], [], []>} : vector<16x16xf32>, vector<16x1xf32>, vector<16x1xf32> -> vector<16x1xf32>
    %c0_22 = arith.constant 0 : index
    %c0_23 = arith.constant 0 : index
    %35 = vector.load %arg7[%c0_22, %c0_23] : memref<16x16xf32, #tpu.memory_space<vmem>>, vector<16x16xf32>
    %cst_24 = arith.constant dense<0.000000e+00> : vector<16x1xf32>
    %36 = tpu.matmul %35, %32, %cst_24 {dimension_numbers = #tpu.dot_dimension_numbers<[1], [0], [0], [1], [0, 0, 1, 1], [], []>} : vector<16x16xf32>, vector<16x1xf32>, vector<16x1xf32> -> vector<16x1xf32>
    %37 = arith.mulf %34, %34 : vector<16x1xf32>
    %38 = arith.subf %36, %37 : vector<16x1xf32>
    %cst_25 = arith.constant 0.000000e+00 : f32
    %39 = vector.broadcast %cst_25 : f32 to vector<16x1xf32>
    %40 = arith.maximumf %38, %39 : vector<16x1xf32>
    %41 = vector.broadcast %34 : vector<16x1xf32> to vector<16x12xf32>
    %42 = arith.subf %27, %41 : vector<16x12xf32>
    %cst_26 = arith.constant 9.99999974E-6 : f32
    %43 = vector.broadcast %cst_26 : f32 to vector<16x1xf32>
    %44 = arith.addf %40, %43 : vector<16x1xf32>
    %45 = math.rsqrt %44 : vector<16x1xf32>
    %46 = vector.broadcast %45 : vector<16x1xf32> to vector<16x12xf32>
    %47 = arith.mulf %42, %46 : vector<16x12xf32>
    %c0_27 = arith.constant 0 : index
    %c384 = arith.constant 384 : index
    %48 = vector.load %arg8[%c0_27, %c384] : memref<16x1024xf32, #tpu.memory_space<vmem>>, vector<16x12xf32>
    %49 = arith.mulf %47, %48 : vector<16x12xf32>
    %c0_28 = arith.constant 0 : index
    %c512 = arith.constant 512 : index
    %50 = vector.load %arg8[%c0_28, %c512] : memref<16x1024xf32, #tpu.memory_space<vmem>>, vector<16x12xf32>
    %51 = arith.addf %49, %50 : vector<16x12xf32>
    %52 = arith.truncf %51 : vector<16x12xf32> to vector<16x12xbf16>
    %c0_29 = arith.constant 0 : index
    %c0_30 = arith.constant 0 : index
    %53 = vector.load %arg5[%c0_29, %c0_30] : memref<12x192xbf16, #tpu.memory_space<vmem>>, vector<12x12xbf16>
    %cst_31 = arith.constant dense<0.000000e+00> : vector<16x12xf32>
    %54 = tpu.matmul %52, %53, %cst_31 {dimension_numbers = #tpu.dot_dimension_numbers<[1], [0], [0], [1], [0, 0, 1, 1], [], []>} : vector<16x12xbf16>, vector<12x12xbf16>, vector<16x12xf32> -> vector<16x12xf32>
    %c0_32 = arith.constant 0 : index
    %c640 = arith.constant 640 : index
    %55 = vector.load %arg8[%c0_32, %c640] : memref<16x1024xf32, #tpu.memory_space<vmem>>, vector<16x12xf32>
    %56 = arith.addf %54, %55 : vector<16x12xf32>
    %57 = arith.addf %56, %3 : vector<16x12xf32>
    %cst_33 = arith.constant 0.000000e+00 : f32
    %58 = vector.broadcast %cst_33 : f32 to vector<16x12xf32>
    %59 = arith.maximumf %57, %58 : vector<16x12xf32>
    %60 = arith.truncf %59 : vector<16x12xf32> to vector<16x12xbf16>
    %c0_34 = arith.constant 0 : index
    %c128_35 = arith.constant 128 : index
    %61 = vector.load %arg5[%c0_34, %c128_35] : memref<12x192xbf16, #tpu.memory_space<vmem>>, vector<12x64xbf16>
    %cst_36 = arith.constant dense<0.000000e+00> : vector<16x64xf32>
    %62 = tpu.matmul %60, %61, %cst_36 {dimension_numbers = #tpu.dot_dimension_numbers<[1], [0], [0], [1], [0, 0, 1, 1], [], []>} : vector<16x12xbf16>, vector<12x64xbf16>, vector<16x64xf32> -> vector<16x64xf32>
    %c0_37 = arith.constant 0 : index
    %c768 = arith.constant 768 : index
    %63 = vector.load %arg8[%c0_37, %c768] : memref<16x1024xf32, #tpu.memory_space<vmem>>, vector<16x64xf32>
    %64 = arith.addf %62, %63 : vector<16x64xf32>
    %cst_38 = arith.constant 0.000000e+00 : f32
    %65 = vector.broadcast %cst_38 : f32 to vector<16x64xf32>
    %66 = arith.maximumf %64, %65 : vector<16x64xf32>
    %67 = arith.truncf %66 : vector<16x64xf32> to vector<16x64xbf16>
    %c0_39 = arith.constant 0 : index
    %c0_40 = arith.constant 0 : index
    %68 = vector.load %arg6[%c0_39, %c0_40] : memref<64x1xbf16, #tpu.memory_space<vmem>>, vector<64x1xbf16>
    %cst_41 = arith.constant dense<0.000000e+00> : vector<16x1xf32>
    %69 = tpu.matmul %67, %68, %cst_41 {dimension_numbers = #tpu.dot_dimension_numbers<[1], [0], [0], [1], [0, 0, 1, 1], [], []>} : vector<16x64xbf16>, vector<64x1xbf16>, vector<16x1xf32> -> vector<16x1xf32>
    %c0_42 = arith.constant 0 : index
    %c896 = arith.constant 896 : index
    %70 = vector.load %arg8[%c0_42, %c896] : memref<16x1024xf32, #tpu.memory_space<vmem>>, vector<16x1xf32>
    %71 = arith.addf %69, %70 : vector<16x1xf32>
    %c0_43 = arith.constant 0 : index
    %c0_44 = arith.constant 0 : index
    %72 = vector.load %arg9[%c0_43, %c0_44] : memref<16x1xf32, #tpu.memory_space<vmem>>, vector<16x1xf32>
    tpu.vector_store %arg9[%c0_43, %c0_44], %71 {strides = array<i32>} : memref<16x1xf32, #tpu.memory_space<vmem>>, vector<16x1xf32>,
    return
  }
}

</mosaic_0001>

<bundles_post_ra>
// kernel: tdg4msf_forward.1
= control target key start
LH: loop header
LB: loop body
LE: loop exit
PB: predicated region body
PF: predicated region fallthrough
CT: control target
= control target key end

     0   :  { %14 = vsyncpa [#allocation3], 0  ;;  %s1304_s0 = inlined_call_operand.vmem [shape: bf16[16,13], index: 0, kind: input, shape index: {}]   ;;  %s1305_s1 = inlined_call_operand.vmem [shape: f32[16,12], index: 1, kind: input, shape index: {}]   ;;  %s1306_s2 = inlined_call_operand.vmem [shape: bf16[13,192], index: 2, kind: input, shape index: {}]   ;;  %s1307_s3 = inlined_call_operand.vmem [shape: bf16[64,144], index: 3, kind: input, shape index: {}]   ;;  %s1308_s4 = inlined_call_operand.hbm [shape: bf16[16,140], index: 4, kind: input, shape index: {}]   ;;  %s1309_s5 = inlined_call_operand.hbm [shape: bf16[12,192], index: 5, kind: input, shape index: {}]   ;;  %s1310_s6 = inlined_call_operand.vmem [shape: bf16[64,1], index: 6, kind: input, shape index: {}]   ;;  %s1311_s7 = inlined_call_operand.hbm [shape: f32[16,16], index: 7, kind: input, shape index: {}]   ;;  %s1312_s8 = inlined_call_operand.hbm [shape: f32[16,1024], index: 8, kind: input, shape index: {}]   ;;  %s1313_s9 = inlined_call_operand.vmem [shape: f32[16,1], index: 9, kind: output, shape index: {}]  }
   0x1   :  { %15 = vsyncpa [#allocation5], 0 }
   0x2   :  { %16 = vsyncpa [#allocation8], 0  ;;  %s1067_s30 = smov [#allocation4]   ;;  %s1068_s11 = smov [#allocation2]  }
   0x3   :  { %s42_s10 = sshll.u32 %s1067_s30, 4  ;;  %s30_s12 = sshll.u32 %s1068_s11, 4  ;;  %s43_s10 = int_to_ptr.vmem [resolvable:$true] %s42_s10  ;;  %s1129_s12 = int_to_ptr.vmem [resolvable:$true] %s30_s12 }
   0x4   :  { %s973_s15 = scalar_lea.hbm %s1309_s5, 256 }
   0x5   :  { %p974_p0 = scmp.ne.s32.totalorder %s1309_s5, %s973_s15  ;;  %p977_p1 = scmp.lt.u32.totalorder %s973_s15, %s1309_s5 }
   0x7   :  { %p979_p2 = pnand %p977_p1, %p974_p0 }
   0x9   :  { %982 = shalt.err (!%p979_p2)
}
   0xa   :  { %s983_s20 = scalar_lea.vmem %s43_s10, 256  ;;  %p988_p4 = scmp.lt.s32.totalorder %s43_s10, %s43_s10 }
   0xb   :  { %p984_p3 = scmp.ne.s32.totalorder %s43_s10, %s983_s20  ;;  %p989_p5 = scmp.lt.s32.totalorder %s983_s20, %s983_s20 }
   0xd   :  { %p990_p6 = por %p989_p5, %p988_p4 }
   0xf   :  { %p991_p7 = pnand %p990_p6, %p984_p3 }
  0x11   :  { %994 = shalt.err (!%p991_p7)
}
  0x12   :  { %s1069_s21 = smov 128   ;;  %s1070_s22 = smov 8  }
  0x13   :  { %48 = dma.hbm_to_vmem [thread:$0]  %s1309_s5, 256, %s43_s10, [#allocation5], %s1069_s21, %s1069_s21, %s1070_s22  }
  0x14   :  { %s995_s27 = scalar_lea.hbm %s1308_s4, 256 }
  0x15   :  { %p996_p8 = scmp.ne.s32.totalorder %s1308_s4, %s995_s27  ;;  %p999_p9 = scmp.lt.u32.totalorder %s995_s27, %s1308_s4 }
  0x17   :  { %p1001_p10 = pnand %p999_p9, %p996_p8 }
  0x19   :  { %1004 = shalt.err (!%p1001_p10)
}
  0x1a   :  { %s1005_s13 = scalar_lea.vmem %s1129_s12, 256  ;;  %p1010_p12 = scmp.lt.s32.totalorder %s1129_s12, %s1129_s12 }
  0x1b   :  { %p1006_p11 = scmp.ne.s32.totalorder %s1129_s12, %s1005_s13  ;;  %p1011_p13 = scmp.lt.s32.totalorder %s1005_s13, %s1005_s13 }
  0x1d   :  { %p1012_p0 = por %p1011_p13, %p1010_p12 }
  0x1f   :  { %p1013_p1 = pnand %p1012_p0, %p1006_p11 }
  0x21   :  { %1016 = shalt.err (!%p1013_p1)
}
  0x22   :  { %36 = dma.hbm_to_vmem [thread:$0]  %s1308_s4, 256, %s1129_s12, [#allocation3], %s1069_s21, %s1069_s21, %s1070_s22  }
  0x23   :  { %s1071_s14 = smov [#allocation6]   ;;  %s1072_s16 = smov [#allocation7]  }
  0x24   :  { %s56_s15 = sshll.u32 %s1071_s14, 4  ;;  %s68_s17 = sshll.u32 %s1072_s16, 4  ;;  %s57_s15 = int_to_ptr.vmem [resolvable:$true] %s56_s15  ;;  %s1166_s17 = int_to_ptr.vmem [resolvable:$true] %s68_s17 }
  0x25   :  { %s1017_s20 = scalar_lea.hbm %s1311_s7, 256 }
  0x26   :  { %p1018_p2 = scmp.ne.s32.totalorder %s1311_s7, %s1017_s20  ;;  %p1021_p3 = scmp.lt.u32.totalorder %s1017_s20, %s1311_s7 }
  0x28   :  { %p1023_p4 = pnand %p1021_p3, %p1018_p2 }
  0x2a   :  { %1026 = shalt.err (!%p1023_p4)
}
  0x2b   :  { %s1027_s4 = scalar_lea.vmem %s57_s15, 256  ;;  %p1032_p6 = scmp.lt.s32.totalorder %s57_s15, %s57_s15 }
  0x2c   :  { %p1028_p5 = scmp.ne.s32.totalorder %s57_s15, %s1027_s4  ;;  %p1033_p7 = scmp.lt.s32.totalorder %s1027_s4, %s1027_s4 }
  0x2e   :  { %p1034_p8 = por %p1033_p7, %p1032_p6 }
  0x30   :  { %p1035_p9 = pnand %p1034_p8, %p1028_p5 }
  0x32   :  { %1038 = shalt.err (!%p1035_p9)
}
  0x33   :  { %62 = dma.hbm_to_vmem [thread:$0]  %s1311_s7, 256, %s57_s15, [#allocation5], %s1069_s21, %s1069_s21, %s1070_s22  }
  0x34   :  { %s1039_s30 = scalar_lea.hbm %s1312_s8, 2048 }
  0x35   :  { %p1040_p10 = scmp.ne.s32.totalorder %s1312_s8, %s1039_s30  ;;  %p1043_p11 = scmp.lt.u32.totalorder %s1039_s30, %s1312_s8 }
  0x37   :  { %p1045_p12 = pnand %p1043_p11, %p1040_p10 }
  0x39   :  { %1048 = shalt.err (!%p1045_p12)
}
  0x3a   :  { %s1049_s14 = scalar_lea.vmem %s1166_s17, 2048  ;;  %p1054_p0 = scmp.lt.s32.totalorder %s1166_s17, %s1166_s17 }
  0x3b   :  { %p1050_p13 = scmp.ne.s32.totalorder %s1166_s17, %s1049_s14  ;;  %p1055_p1 = scmp.lt.s32.totalorder %s1049_s14, %s1049_s14 }
  0x3d   :  { %p1056_p2 = por %p1055_p1, %p1054_p0 }
  0x3f   :  { %p1057_p3 = pnand %p1056_p2, %p1050_p13 }
  0x41   :  { %1060 = shalt.err (!%p1057_p3)
}
  0x42   :  { %s1073_s7 = smov 1024   ;;  %s1074_s21 = smov 64  }
  0x43   :  { %74 = dma.hbm_to_vmem [thread:$0]  %s1312_s8, 2048, %s1166_s17, [#allocation8], %s1073_s7, %s1073_s7, %s1074_s21  }
  0x44   :  { %1061 = dma.done.wait [#allocation3], 256  }
  0x45   :  { %1062 = vsyncadd [#allocation3], 4294967040 }
  0x46   :  { %1063 = dma.done.wait [#allocation5], 512  }
  0x47   :  { %1064 = vsyncadd [#allocation5], 4294966784 }
  0x48   :  { %1065 = dma.done.wait [#allocation8], 2048  }
  0x49   :  { %1066 = vsyncadd [#allocation8], 4294965248  ;;  %vm109_vm0 = vcmask 1045504   ;;  %v1075_v0 = vmov 0   ;;  %vm110_vm1 = vcmask 1046528   ;;  %v1076_v1 = vmov 65535  }
  0x4a   :  { %151 = vmatprep.mubr.bf16.mxu0 %v1075_v0  ;;  %251 = vmatprep.mubr.bf16.mxu1 %v1075_v0  ;;  %v111_v2 = vsel %vm109_vm0, 4294967295, %v1076_v1  ;;  %v937_v4 = vld [vmem:[%s1306_s2 + $0x4] ss:$8 sps:$4 sm:$0x7f]   ;;  %v943_v9 = vld [vmem:[%s1307_s3] ss:$8 sps:$4 sm:$0xff]  }
  0x4b   :  { %936 = vset.pattern.permute.xlu1 %v1075_v0  ;;  %935 = vset.pattern.permute.xlu0 %v1075_v0  ;;  %v112_v3 = vsel %vm110_vm1, %v111_v2, 0  ;;  %v939_v5 = vld [vmem:[%s1306_s2] ss:$8 sps:$4 sm:$0x7f]   ;;  %v941_v8 = vld [vmem:[%s1307_s3 + $0x4] ss:$8 sps:$4 sm:$0xff]  }
  0x4c   :  { %v117_v6 = vand.u32 %v937_v4, %v112_v3  ;;  %v114_v7 = vand.u32 %v939_v5, %v112_v3  ;;  %v940_v10 = vld [vmem:[%s1304_s0] sm:$0xff]   ;;  %v944_v11 = vld [vmem:[%s1307_s3 + $0x14] ss:$8 sps:$4 sm:$0xff]   ;;  %vm105_vm2 = vcmask 105472   ;;  %219 = vmatprep.subr.bf16.mxu1 %v941_v8  ;;  %v946_v12 = vld [vmem:[%s1307_s3 + $0x10] ss:$8 sps:$4 sm:$0xff]  }
  0x4d   :  { %220 = vmatpush1.bf16.msra.mxu1 %v943_v9  ;;  %v947_v13 = vld [vmem:[%s1307_s3 + $0x24] ss:$8 sps:$4 sm:$0xff]   ;;  %v949_v14 = vld [vmem:[%s1307_s3 + $0x20] ss:$8 sps:$4 sm:$0xff]   ;;  %v950_v15 = vld [vmem:[%s1307_s3 + $0x34] ss:$8 sps:$4 sm:$0xff]  }
  0x4e   :  { %119 = vmatprep.subr.bf16.mxu0 %v117_v6  ;;  %221 = vmatprep.subr.bf16.mxu1 %v944_v11  ;;  %v952_v16 = vld [vmem:[%s1307_s3 + $0x30] ss:$8 sps:$4 sm:$0xff]   ;;  %vm215_vm3 = vcmask 523264   ;;  %v1077_v22 = vmov 0.0   ;;  %vm1078_vm4 = vmmov 0   ;;  %vm282_vm5 = vcmask 130048  }
  0x4f   :  { %120 = vmatpush1.bf16.msra.mxu0 %v114_v7  ;;  %v171_v23 = vld [vmem:[#allocation7] sm:$0xff]  ;;  %v953_v32 = vld [vmem:[#allocation2] ss:$8 sps:$4 sm:$0xff]   ;;  %v954_v33 = vld [vmem:[#allocation2 + $0x4] ss:$8 sps:$4 sm:$0xff]   ;;  %vm388_vm6 = vcmask 97280  }
  0x50   :  { %865 = vmatprep.subr.bf16.mxu0 %v1077_v22  ;;  %v173_v25 = vld [vmem:[#allocation7 + $0x40] sm:$0xff]  ;;  %v172_v34 = vld [vmem:[#allocation7 + $0x8] sm:$0xff]  ;;  %v332_v53 = vld [vmem:[#allocation7 + $0x10] sm:$0xff]  ;;  %vm802_vm7 = vcmask 7168  }
  0x51   :  { %222 = vmatpush1.bf16.msra.mxu1 %v946_v12  ;;  %v174_v35 = vld [vmem:[#allocation7 + $0x48] sm:$0xff]  ;;  %v384_v55 = vld [vmem:[%s1305_s1] sm:$0xff]  ;;  %v385_v60 = vld [vmem:[%s1305_s1 + $0x8] sm:$0xff] }
  0x52   :  { %815 = vmatmul.mubr.msk.bf16.vlgmr.msra.gmra.mrb[0].mxu0 %vm105_vm2, %v940_v10  ;;  %223 = vmatprep.subr.bf16.mxu1 %v947_v13  ;;  %v333_v56 = vld [vmem:[#allocation7 + $0x50] sm:$0xff] }
  0x53   :  { %867 = vmatprep.mubr.msk.bf16.mxu0 %vm1078_vm4, %v1077_v22  ;;  %v403_v7 = vld [vmem:[#allocation6] sm:$0xff] }
  0x55   :  { %224 = vmatpush1.bf16.msra.mxu1 %v949_v14  ;;  %v404_v14 = vld [vmem:[#allocation6 + $0x8] sm:$0xff] }
  0x56   :  { %225 = vmatprep.subr.bf16.mxu1 %v950_v15 }
  0x59   :  { %226 = vmatpush1.bf16.msra.mxu1 %v952_v16 }
  0x5a   :  { %891 = vmatprep.subr.bf16.mxu1 %v1077_v22 }
 0x125   :  { %v1234_v17 = vpop.f32.mrb[0].mxu0 }
 0x126   :  { %v155_v18 = vpop.f32.mrb[1].mxu0 }
 0x127   :  { %v1236_v19 = vpop.f32.mrb[2].mxu0 }
 0x128   :  { %v159_v20 = vpop.f32.mrb[3].mxu0 }
 0x129   :  { %v162_v21 = vpack.c.bf16 %v159_v20, %v155_v18 }
 0x12b   :  { %824 = vmatmul.mubr.msk.bf16.vlgmr.msra.gmra.mrb[0].mxu1 %vm215_vm3, %v162_v21 }
 0x12c   :  { %893 = vmatprep.mubr.msk.bf16.mxu1 %vm1078_vm4, %v1077_v22 }
 0x1fe   :  { %v253_v24 = vpop.f32.mrb[0].mxu1 }
 0x1ff   :  { %v255_v26 = vpop.f32.mrb[1].mxu1  ;;  %v254_v28 = vadd.f32 %v253_v24, %v171_v23 }
 0x200   :  { %v257_v27 = vpop.f32.mrb[2].mxu1  ;;  %v256_v36 = vadd.f32 %v255_v26, %v172_v34 }
 0x201   :  { %v258_v29 = vadd.f32 %v257_v27, %v173_v25  ;;  %v259_v30 = vpop.f32.mrb[3].mxu1 }
 0x202   :  { %v260_v37 = vadd.f32 %v259_v30, %v174_v35  ;;  %v825_v38 = vmul.f32 -1.442695, %v256_v36 }
 0x203   :  { %v276_v31 = vpack.c.bf16 %v258_v29, %v254_v28 }
 0x204   :  { %v826_v39 = vmul.f32 -1.442695, %v260_v37  ;;  %961 = vpow2.f32 %v825_v38 }
 0x205   :  { %866 = vmatpush3.bf16.msra.mxu0 %v276_v31 }
 0x206   :  { %871 = vmatprep.subr.bf16.mxu0 %v1077_v22  ;;  %963 = vpow2.f32 %v826_v39  ;;  %v595_v39 = vld [vmem:[#allocation7 + $0x18] sm:$0xff] }
 0x208   :  { %868 = vmatmul.mubr.msk.bf16.vlgmr.msra.gmra.mrb[4].mxu0 %vm282_vm5, %v953_v32  ;;  %v955_v32 = vld [vmem:[#allocation4] ss:$8 sps:$4 sm:$0x3f]  }
 0x209   :  { %873 = vmatprep.mubr.msk.bf16.mxu0 %vm1078_vm4, %v1077_v22  ;;  %872 = vmatpush3.bf16.msra.mxu0 %v954_v33  ;;  %v617_v33 = vsel %vm109_vm0, %v955_v32, 0 }
 0x20a   :  { %892 = vmatpush3.bf16.msra.mxu1 %v617_v33 }
 0x20b   :  { %903 = vmatprep.subr.bf16.mxu1 %v1077_v22 }
 0x20e   :  { %v962_v40 = vpop.eup %961 }
 0x20f   :  { %v268_v42 = vadd.f32 1.0, %v962_v40 }
 0x210   :  { %v964_v41 = vpop.eup %963 }
 0x211   :  { %v269_v43 = vadd.f32 1.0, %v964_v41  ;;  %965 = vrcp.f32 %v268_v42  ;;  %v596_v41 = vld [vmem:[#allocation7 + $0x58] sm:$0xff] }
 0x213   :  { %967 = vrcp.f32 %v269_v43 }
 0x21b   :  { %v966_v44 = vpop.eup %965 }
 0x21d   :  { %v968_v48 = vpop.eup %967 }
 0x2db   :  { %v320_v45 = vpop.f32.mrb[4].mxu0 }
 0x2dc   :  { %v327_v46 = vmul.f32 %v966_v44, %v320_v45  ;;  %v869_v47 = vpop.f32.mrb[5].mxu0  ;;  %v599_v45 = vld [vmem:[#allocation7 + $0x20] sm:$0xff] }
 0x2dd   :  { %v323_v49 = vpop.f32.mrb[6].mxu0 }
 0x2de   :  { %v328_v50 = vmul.f32 %v968_v48, %v323_v49  ;;  %v870_v51 = vpop.f32.mrb[7].mxu0 }
 0x2df   :  { %v956_v51 = vld [vmem:[#allocation4 + $0x4] ss:$8 sps:$4 sm:$0x3f]  }
 0x2e0   :  { %v329_v52 = vpack.c.bf16 %v328_v50, %v327_v46  ;;  %v600_v46 = vld [vmem:[#allocation7 + $0x60] sm:$0xff] }
 0x2e2   :  { %874 = vmatmul.mubr.msk.bf16.vlgmr.msra.gmra.mrb[8].mxu0 %vm282_vm5, %v329_v52  ;;  %v678_v52 = vsel %vm109_vm0, %v956_v51, 0 }
 0x2e3   :  { %881 = vmatprep.mubr.msk.f32.mxu0 %vm282_vm5, %v403_v7 }
 0x3b5   :  { %v377_v54 = vpop.f32.mrb[8].mxu0 }
 0x3b6   :  { %v378_v57 = vadd.f32 %v377_v54, %v332_v53  ;;  %v875_v58 = vpop.f32.mrb[9].mxu0  ;;  %v957_v53 = vld [vmem:[%s1310_s6] sm:$0xff]   ;;  %v958_v54 = vld [vmem:[%s1310_s6 + $0x8] sm:$0xff]  }
 0x3b7   :  { %v380_v59 = vpop.f32.mrb[10].mxu0 }
 0x3b8   :  { %v386_v61 = vadd.f32 %v384_v55, %v378_v57  ;;  %v381_v62 = vadd.f32 %v380_v59, %v333_v56  ;;  %v876_v63 = vpop.f32.mrb[11].mxu0  ;;  %v606_v55 = vld [vmem:[#allocation7 + $0x28] sm:$0xff] }
 0x3b9   :  { %v607_v57 = vld [vmem:[#allocation7 + $0x68] sm:$0xff] }
 0x3ba   :  { %v1256_v0 = vadd.f32 %v385_v60, %v381_v62  ;;  %v389_v1 = vsel %vm388_vm6, %v386_v61, 0.0  ;;  %v395_v2 = vmul.f32 %v386_v61, %v386_v61 }
 0x3bb   :  { %390 = vadd.xlane.f32.xlu0 %v389_v1 }
 0x3bc   :  { %v397_v3 = vsel %vm388_vm6, %v395_v2, 0.0  ;;  %v396_v4 = vmul.f32 %v1256_v0, %v1256_v0  ;;  %v392_v5 = vsel %vm388_vm6, %v1256_v0, 0.0 }
 0x3bd   :  { %398 = vadd.xlane.f32.xlu1 %v397_v3 }
 0x3be   :  { %v400_v6 = vsel %vm388_vm6, %v396_v4, 0.0  ;;  %v959_v4 = vld [vmem:[%s1310_s6 + $0x10] sm:$0xff]  }
 0x3bf   :  { %393 = vadd.xlane.f32.xlu0 %v392_v5  ;;  %v667_v5 = vld [vmem:[#allocation7 + $0x30] sm:$0xff] }
 0x3c1   :  { %401 = vadd.xlane.f32.xlu1 %v400_v6 }
 0x448   :  { %v391_v8 = vpop.xlane.xlu0 %390 }
 0x44a   :  { %v399_v9 = vpop.xlane.xlu1 %398 }
 0x44c   :  { %v394_v10 = vpop.xlane.xlu0 %393 }
 0x44d   :  { %v915_v11 = vpack.c.bf16 %v394_v10, %v391_v8 }
 0x44e   :  { %v402_v12 = vpop.xlane.xlu1 %401 }
 0x44f   :  { %v919_v13 = vpack.c.bf16 %v402_v12, %v399_v9  ;;  %916 = vmatprep.subr.bf16.mxu0 %v915_v11 }
 0x450   :  { %918 = vmatpush3.bf16.msra.mxu0 %v915_v11 }
 0x451   :  { %920 = vmatprep.subr.bf16.mxu0 %v919_v13 }
 0x453   :  { %882 = vmatmul.mubr.msk.f32.vlgmr.msra.gmra.mrb[12].mxu0 %vm282_vm5, %v404_v14 }
 0x454   :  { %922 = vmatpush3.bf16.msra.mxu0 %v919_v13  ;;  %888 = vmatprep.mubr.msk.f32.mxu0 %vm282_vm5, %v403_v7 }
 0x455   :  { %897 = vmatprep.subr.bf16.mxu0 %v1077_v22 }
 0x457   :  { %889 = vmatmul.mubr.msk.f32.vlgmr.msra.gmra.mrb[14].mxu0 %vm282_vm5, %v404_v14 }
 0x458   :  { %899 = vmatprep.mubr.msk.bf16.mxu0 %vm1078_vm4, %v1077_v22  ;;  %898 = vmatpush3.bf16.msra.mxu0 %v678_v52 }
 0x526   :  { %v883_v15 = vpop.f32.mrb[12].mxu0 }
 0x527   :  { %574 = vperm.xlu1 %936, %v883_v15   ;;  %v477_v16 = vpop.f32.mrb[13].mxu0  ;;  %v562_v18 = vmul.f32 %v883_v15, %v883_v15  ;;  %v732_v15 = vld [vmem:[#allocation7 + $0x38] sm:$0xff] }
 0x528   :  { %569 = vperm.xlu0 %935, %v477_v16   ;;  %v561_v20 = vmul.f32 %v477_v16, %v477_v16  ;;  %v733_v16 = vld [vmem:[#allocation7 + $0x78] sm:$0xff] }
 0x52a   :  { %v890_v21 = vpop.f32.mrb[14].mxu0 }
 0x52b   :  { %v564_v23 = vsub.f32 %v890_v21, %v562_v18  ;;  %v552_v24 = vpop.f32.mrb[15].mxu0 }
 0x52c   :  { %v563_v25 = vsub.f32 %v552_v24, %v561_v20 }
 0x52d   :  { %v566_v26 = vmax.f32 %v564_v23, 0.0 }
 0x52e   :  { %v565_v27 = vmax.f32 %v563_v25, 0.0 }
 0x52f   :  { %v580_v29 = vadd.f32 1e-05, %v566_v26 }
 0x530   :  { %v579_v28 = vadd.f32 1e-05, %v565_v27 }
 0x532   :  { %969 = vrsqrt.f32 %v579_v28 }
 0x533   :  { %971 = vrsqrt.f32 %v580_v29 }
 0x53c   :  { %v970_v30 = vpop.eup %969 }
 0x53d   :  { %585 = vperm.xlu1 %936, %v970_v30   ;;  %v972_v31 = vpop.eup %971 }
 0x541   :  { %590 = vperm.xlu1 %936, %v972_v31  }
 0x5a6   :  { %v575_v34 = vpop.permute.xlu1 %574 }
 0x5a7   :  { %v570_v35 = vpop.permute.xlu0 %569  ;;  %v578_v40 = vsub.f32 %v1256_v0, %v575_v34 }
 0x5a8   :  { %v577_v36 = vsub.f32 %v386_v61, %v570_v35 }
 0x5bc   :  { %v586_v37 = vpop.permute.xlu1 %585 }
 0x5bd   :  { %v593_v38 = vmul.f32 %v586_v37, %v577_v36 }
 0x5bf   :  { %v597_v43 = vmul.f32 %v595_v39, %v593_v38 }
 0x5c0   :  { %v591_v42 = vpop.permute.xlu1 %590 }
 0x5c1   :  { %v594_v44 = vmul.f32 %v591_v42, %v578_v40  ;;  %v601_v48 = vadd.f32 %v599_v45, %v597_v43 }
 0x5c3   :  { %v598_v47 = vmul.f32 %v596_v41, %v594_v44 }
 0x5c5   :  { %v602_v49 = vadd.f32 %v600_v46, %v598_v47 }
 0x5c7   :  { %v603_v50 = vpack.c.bf16 %v602_v49, %v601_v48 }
 0x5c9   :  { %894 = vmatmul.mubr.msk.bf16.vlgmr.msra.gmra.mrb[4].mxu1 %vm388_vm6, %v603_v50 }
 0x5ca   :  { %911 = vmatprep.mubr.msk.bf16.mxu1 %vm1078_vm4, %v1077_v22  ;;  %904 = vmatpush3.bf16.msra.mxu1 %v957_v53 }
 0x5cb   :  { %905 = vmatprep.subr.bf16.mxu1 %v1077_v22 }
 0x5ce   :  { %906 = vmatpush3.bf16.msra.mxu1 %v958_v54 }
 0x5cf   :  { %907 = vmatprep.subr.bf16.mxu1 %v1077_v22 }
 0x5d2   :  { %908 = vmatpush3.bf16.msra.mxu1 %v959_v4 }
 0x5d3   :  { %909 = vmatprep.subr.bf16.mxu1 %v1077_v22 }
 0x69c   :  { %v653_v56 = vpop.f32.mrb[4].mxu1 }
 0x69d   :  { %v654_v58 = vadd.f32 %v653_v56, %v606_v55  ;;  %v895_v59 = vpop.f32.mrb[5].mxu1 }
 0x69e   :  { %v656_v60 = vpop.f32.mrb[6].mxu1 }
 0x69f   :  { %v660_v61 = vadd.f32 %v654_v58, %v1234_v17  ;;  %v657_v62 = vadd.f32 %v656_v60, %v607_v57  ;;  %v896_v63 = vpop.f32.mrb[7].mxu1  ;;  %v960_v17 = vld [vmem:[%s1310_s6 + $0x18] sm:$0xff]  }
 0x6a0   :  { %910 = vmatpush3.bf16.msra.mxu1 %v960_v17 }
 0x6a1   :  { %v661_v0 = vadd.f32 %v657_v62, %v1236_v19  ;;  %v662_v1 = vmax.f32 %v660_v61, 0.0  ;;  %v668_v19 = vld [vmem:[#allocation7 + $0x70] sm:$0xff] }
 0x6a3   :  { %v663_v2 = vmax.f32 %v661_v0, 0.0 }
 0x6a5   :  { %v664_v3 = vpack.c.bf16 %v663_v2, %v662_v1 }
 0x6a7   :  { %900 = vmatmul.mubr.msk.bf16.vlgmr.msra.gmra.mrb[16].mxu0 %vm388_vm6, %v664_v3 }
 0x77a   :  { %v714_v6 = vpop.f32.mrb[16].mxu0 }
 0x77b   :  { %v715_v7 = vadd.f32 %v714_v6, %v667_v5  ;;  %v901_v8 = vpop.f32.mrb[17].mxu0 }
 0x77c   :  { %v717_v9 = vpop.f32.mrb[18].mxu0 }
 0x77d   :  { %v718_v10 = vadd.f32 %v717_v9, %v668_v19  ;;  %v902_v11 = vpop.f32.mrb[19].mxu0  ;;  %v721_v12 = vmax.f32 %v715_v7, 0.0 }
 0x77f   :  { %v722_v13 = vmax.f32 %v718_v10, 0.0 }
 0x781   :  { %v723_v14 = vpack.c.bf16 %v722_v13, %v721_v12 }
 0x783   :  { %912 = vmatmul.mubr.msk.bf16.vlgmr.msra.gmra.mrb[8].mxu1 %vm215_vm3, %v723_v14 }
 0x856   :  { %v795_v22 = vpop.f32.mrb[8].mxu1 }
 0x857   :  { %v796_v18 = vadd.f32 %v795_v22, %v732_v15  ;;  %v913_v20 = vpop.f32.mrb[9].mxu1 }
 0x858   :  { %v798_v21 = vpop.f32.mrb[10].mxu1 }
 0x859   :  { %803 = vst.msk [vmem:[%s1313_s9] sm:$0xff] %vm802_vm7, %v796_v18  ;;  %v799_v23 = vadd.f32 %v798_v21, %v733_v16  ;;  %v914_v24 = vpop.f32.mrb[11].mxu1 }
 0x85b   :  { %804 = vst.msk [vmem:[%s1313_s9 + $0x8] sm:$0xff] %vm802_vm7, %v799_v23 }
 0x85c   :  { %809 = vsyncpa [#allocation3], 1 }
 0x85d   :  { %810 = vsyncpa [#allocation5], 1 }
 0x85e   :  { %811 = vsyncpa [#allocation8], 1 }

</bundles_post_ra>
